<compile_context>
chip_gen: v7x
topology: tpu7x:2x2x1
jax: 0.10.0
libtpu: 0.0.40
codegen_flags: <defaults>
</compile_context>

<pallas_src>
import functools

import jax
import jax.numpy as jnp
from jax.experimental import pallas as pl
from jax.experimental.pallas import tpu as pltpu


_LANES = 128             # pad Cout to this many lanes (lane-dense output stores)
_ROW_TILE_TARGET = 1024  # pooled-row tile target for large problems


def _conv_bn_pool_kernel(p_ref, w_ref, shift_ref, o_ref, *, relu, tm):
    """One fused conv(matmul) + 2x2 max-pool + BN shift (+ optional ReLU) tile.

    p_ref:     (4*tm, KF) bf16  — rows [j*tm:(j+1)*tm] are pool position j
    w_ref:     (KF, 128)  bf16  — conv weights * BN scale, Cout zero-padded
    shift_ref: (1, 128)   f32   — folded conv-bias + BN shift (padded)
    o_ref:     (tm, 128)  bf16
    """
    # Single MXU pass for all 4 pool positions; f32 accumulation.
    # (Useful MXU lanes are <1% at Cout=10/20 — this kernel is HBM/overhead
    #  bound, so no matmul-side tuning is worthwhile.)
    y = jnp.dot(p_ref[...], w_ref[...], preferred_element_type=jnp.float32)
    # 2x2 max-pool == elementwise max over the 4 pool-position row groups
    # (static, tm-aligned sublane slices — no in-kernel reshape needed).
    out = jnp.maximum(jnp.maximum(y[0 * tm:1 * tm], y[1 * tm:2 * tm]),
                      jnp.maximum(y[2 * tm:3 * tm], y[3 * tm:4 * tm]))
    # Shift after the max (exact algebra) -> affine runs on (tm, 128) only.
    out = out + shift_ref[...]
    if relu:
        out = jnp.maximum(out, 0.0)
    o_ref[...] = out.astype(o_ref.dtype)


def _choose_rows_tile(mp, target=_ROW_TILE_TARGET):
    """Pick the pooled-row tile: multiple of 16 (bf16 sublane packing).

    Tiny problems (mp <= target) run as ONE grid step — per-step overhead
    (~0.35us + pipeline prologue) dominates there.  Larger problems split into
    >= 2 steps so both v7x TensorCores get work."""
    if mp <= target:
        return max(16, ((mp + 15) // 16) * 16)
    tm = min(target, pl.cdiv(mp, 2))
    return max(16, ((tm + 15) // 16) * 16)


def conv_bn_pool(x_nhwc, w_oihw, bias, gamma, beta, run_mean, run_var,
                 *, relu, eps=1e-5):
    """Valid 5x5 conv -> BatchNorm(eval) -> 2x2 max-pool -> (optional ReLU)."""
    N, H, W, Cin = x_nhwc.shape
    Cout, Cin_w, kh, kw = w_oihw.shape
    assert Cin == Cin_w and kh == kw and Cout <= _LANES
    k = kh
    OH, OW = H - k + 1, W - k + 1
    PH, PW = OH // 2, OW // 2
    KF = k * k * Cin
    Mp = N * PH * PW

    # im2col built directly in bf16 AND directly grouped by pool position:
    # pool position (a, b) in {0,1}^2, pooled output row (n, ph, pw) reads the
    # conv output at (2*ph + a, 2*pw + b); feature order is (dh, dw, cin).
    # The 25x-expanded intermediate is materialized once, in bf16.
    xb = x_nhwc.astype(jnp.bfloat16)
    pos_slabs = []
    for a in range(2):
        for b in range(2):
            cols = []
            for dh in range(k):
                for dw in range(k):
                    h0, w0 = a + dh, b + dw
                    cols.append(xb[:, h0:h0 + 2 * PH:2, w0:w0 + 2 * PW:2, :])
            slab = jnp.stack(cols, axis=3).reshape(N, PH, PW, KF)
            pos_slabs.append(slab.reshape(Mp, KF))
    patches = jnp.stack(pos_slabs, axis=0)          # (4, Mp, KF) bf16

    tm = _choose_rows_tile(Mp)
    grid_m = pl.cdiv(Mp, tm)
    mp_pad = grid_m * tm
    if mp_pad != Mp:
        patches = jnp.pad(patches, ((0, 0), (0, mp_pad - Mp), (0, 0)))

    # Lay rows out so each grid block is one contiguous (4*tm, KF) slab.
    patches = (patches.reshape(4, grid_m, tm, KF)
                      .transpose(1, 0, 2, 3)
                      .reshape(grid_m * 4 * tm, KF))

    # Fold BatchNorm (inference-mode running statistics) + conv bias:
    #   BN(conv(x) + bias) = scale * conv(x) + shift
    # scale is folded into the weight matrix (commutes through the matmul and
    # stays inside the pool max, matching pool-after-BN); shift is applied
    # in-kernel after the max.
    scale = gamma / jnp.sqrt(run_var + eps)
    shift = beta + (bias - run_mean) * scale

    # Weight (Cout, Cin, kh, kw) -> (KF, Cout) in matching (dh, dw, cin) order,
    # scale folded in, zero-padded to 128 output lanes.
    w_mat = jnp.transpose(w_oihw, (2, 3, 1, 0)).reshape(KF, Cout)
    w_mat = w_mat * scale[None, :]
    w_mat = jnp.pad(w_mat, ((0, 0), (0, _LANES - Cout))).astype(jnp.bfloat16)
    shift = jnp.pad(shift, (0, _LANES - Cout)).reshape(1, _LANES).astype(jnp.float32)

    out = pl.pallas_call(
        functools.partial(_conv_bn_pool_kernel, relu=relu, tm=tm),
        out_shape=jax.ShapeDtypeStruct((mp_pad, _LANES), jnp.bfloat16),
        grid_spec=pltpu.PrefetchScalarGridSpec(
            num_scalar_prefetch=0,
            grid=(grid_m,),
            in_specs=[
                pl.BlockSpec((4 * tm, KF), lambda i: (i, 0)),
                pl.BlockSpec((KF, _LANES), lambda i: (0, 0)),   # resident weights
                pl.BlockSpec((1, _LANES), lambda i: (0, 0)),    # resident shift
            ],
            out_specs=pl.BlockSpec((tm, _LANES), lambda i: (i, 0)),
        ),
        compiler_params=pltpu.CompilerParams(
            dimension_semantics=("parallel",),
            vmem_limit_bytes=48 * 1024 * 1024),
    )(patches, w_mat, shift)

    out = out[:Mp, :Cout]                 # drop row padding + lane padding
    return out.reshape(N, PH, PW, Cout)


def init_params(key):
    k1, k2, k3, k4 = jax.random.split(key, 4)
    p = {}
    # conv1: Conv2d(1, 10, kernel_size=5)
    fan1 = 1 * 5 * 5
    p["w1"] = jax.random.normal(k1, (10, 1, 5, 5), jnp.float32) / jnp.sqrt(fan1)
    p["b1"] = jax.random.normal(k2, (10,), jnp.float32) * 0.01
    # conv2: Conv2d(10, 20, kernel_size=5)
    fan2 = 10 * 5 * 5
    p["w2"] = jax.random.normal(k3, (20, 10, 5, 5), jnp.float32) / jnp.sqrt(fan2)
    p["b2"] = jax.random.normal(k4, (20,), jnp.float32) * 0.01
    # BatchNorm2d defaults: gamma=1, beta=0, running_mean=0, running_var=1
    for name, c in (("bn1", 10), ("bn2", 20)):
        p[f"{name}_gamma"] = jnp.ones((c,), jnp.float32)
        p[f"{name}_beta"] = jnp.zeros((c,), jnp.float32)
        p[f"{name}_mean"] = jnp.zeros((c,), jnp.float32)
        p[f"{name}_var"] = jnp.ones((c,), jnp.float32)
    return p


@jax.jit
def net_conv_part(x_nchw, p):
    """Forward of NetConvPart. Input NCHW (PyTorch), output NCHW."""
    x = jnp.transpose(x_nchw, (0, 2, 3, 1)).astype(jnp.float32)  # NCHW -> NHWC

    # x = relu(max_pool2d(bn1(conv1(x)), 2))
    x = conv_bn_pool(x, p["w1"], p["b1"],
                     p["bn1_gamma"], p["bn1_beta"], p["bn1_mean"], p["bn1_var"],
                     relu=True)

    # x = max_pool2d(dropout2d(bn2(conv2(x))), 2)
    # TODO(synk): Dropout2d / BatchNorm use eval-mode semantics (dropout =
    # identity, BN uses running statistics); training-mode batch stats /
    # channel dropout are not implemented.  No ReLU after layer 2, matching
    # NetConvPart.forward.
    x = conv_bn_pool(x, p["w2"], p["b2"],
                     p["bn2_gamma"], p["bn2_beta"], p["bn2_mean"], p["bn2_var"],
                     relu=False)

    return jnp.transpose(x, (0, 3, 1, 2)).astype(jnp.float32)  # NHWC -> NCHW


if __name__ == "__main__":
    key = jax.random.PRNGKey(0)
    pkey, xkey = jax.random.split(key)
    params = init_params(pkey)
    # MNIST-shaped input, small batch: (N=2, C=1, H=28, W=28) NCHW.
    x = jax.random.normal(xkey, (2, 1, 28, 28), jnp.float32)
    out = jax.block_until_ready(net_conv_part(x, params))
    assert out.shape == (2, 20, 4, 4), out.shape
    assert jnp.all(jnp.isfinite(out))
    print("KERNEL_OK")
</pallas_src>

<mosaic_0001>
module attributes {stable_mosaic.version = 11 : i64} {
  func.func @_conv_bn_pool_kernel(%arg0: i32, %arg1: memref<1152x25xbf16, #tpu.memory_space<vmem>>, %arg2: memref<25x128xbf16, #tpu.memory_space<vmem>>, %arg3: memref<1x128xf32, #tpu.memory_space<vmem>>, %arg4: memref<288x128xbf16, #tpu.memory_space<vmem>>) attributes {dimension_semantics = [#tpu.dimension_semantics<parallel>], iteration_bounds = array<i64: 1>, scalar_prefetch = 0 : i64, scratch_operands = 0 : i64, tpu.core_type = #tpu.core_type<tc>, window_params = [{transform_indices = @transform_0, window_bounds = array<i64: 1152, 25>}, {pipeline_mode = #tpu.pipeline_mode<synchronous>, transform_indices = @transform_1, window_bounds = array<i64: 25, 128>}, {pipeline_mode = #tpu.pipeline_mode<synchronous>, transform_indices = @transform_2, window_bounds = array<i64: 1, 128>}, {transform_indices = @transform_3, window_bounds = array<i64: 288, 128>}]} {
    %c0 = arith.constant 0 : index
    %c0_0 = arith.constant 0 : index
    %0 = vector.load %arg1[%c0, %c0_0] : memref<1152x25xbf16, #tpu.memory_space<vmem>>, vector<1152x25xbf16>
    %c0_1 = arith.constant 0 : index
    %c0_2 = arith.constant 0 : index
    %1 = vector.load %arg2[%c0_1, %c0_2] : memref<25x128xbf16, #tpu.memory_space<vmem>>, vector<25x128xbf16>
    %cst = arith.constant dense<0.000000e+00> : vector<1152x128xf32>
    %2 = tpu.matmul %0, %1, %cst {dimension_numbers = #tpu.dot_dimension_numbers<[1], [0], [0], [1], [0, 0, 1, 1], [], []>} : vector<1152x25xbf16>, vector<25x128xbf16>, vector<1152x128xf32> -> vector<1152x128xf32>
    %3 = vector.extract_strided_slice %2 {offsets = [0, 0], sizes = [288, 128], strides = [1, 1]} : vector<1152x128xf32> to vector<288x128xf32>
    %4 = vector.extract_strided_slice %2 {offsets = [288, 0], sizes = [288, 128], strides = [1, 1]} : vector<1152x128xf32> to vector<288x128xf32>
    %5 = arith.maximumf %3, %4 : vector<288x128xf32>
    %6 = vector.extract_strided_slice %2 {offsets = [576, 0], sizes = [288, 128], strides = [1, 1]} : vector<1152x128xf32> to vector<288x128xf32>
    %7 = vector.extract_strided_slice %2 {offsets = [864, 0], sizes = [288, 128], strides = [1, 1]} : vector<1152x128xf32> to vector<288x128xf32>
    %8 = arith.maximumf %6, %7 : vector<288x128xf32>
    %9 = arith.maximumf %5, %8 : vector<288x128xf32>
    %c0_3 = arith.constant 0 : index
    %c0_4 = arith.constant 0 : index
    %10 = vector.load %arg3[%c0_3, %c0_4] : memref<1x128xf32, #tpu.memory_space<vmem>>, vector<1x128xf32>
    %11 = vector.broadcast %10 : vector<1x128xf32> to vector<288x128xf32>
    %12 = arith.addf %9, %11 : vector<288x128xf32>
    %cst_5 = arith.constant 0.000000e+00 : f32
    %13 = vector.broadcast %cst_5 : f32 to vector<288x128xf32>
    %14 = arith.maximumf %12, %13 : vector<288x128xf32>
    %15 = arith.truncf %14 : vector<288x128xf32> to vector<288x128xbf16>
    %c0_6 = arith.constant 0 : index
    %c0_7 = arith.constant 0 : index
    %16 = vector.load %arg4[%c0_6, %c0_7] : memref<288x128xbf16, #tpu.memory_space<vmem>>, vector<288x128xbf16>
    tpu.vector_store %arg4[%c0_6, %c0_7], %15 {strides = array<i32>} : memref<288x128xbf16, #tpu.memory_space<vmem>>, vector<288x128xbf16>,
    return
  }
  func.func @transform_0(%arg0: i32) -> (i32, i32) {
    %c0_i32 = arith.constant 0 : i32
    %c0_i32_0 = arith.constant 0 : i32
    return %arg0, %c0_i32 : i32, i32
  }
  func.func @transform_1(%arg0: i32) -> (i32, i32) {
    %c0_i32 = arith.constant 0 : i32
    %c0_i32_0 = arith.constant 0 : i32
    %c0_i32_1 = arith.constant 0 : i32
    return %c0_i32, %c0_i32_0 : i32, i32
  }
  func.func @transform_2(%arg0: i32) -> (i32, i32) {
    %c0_i32 = arith.constant 0 : i32
    %c0_i32_0 = arith.constant 0 : i32
    %c0_i32_1 = arith.constant 0 : i32
    return %c0_i32, %c0_i32_0 : i32, i32
  }
  func.func @transform_3(%arg0: i32) -> (i32, i32) {
    %c0_i32 = arith.constant 0 : i32
    %c0_i32_0 = arith.constant 0 : i32
    return %arg0, %c0_i32 : i32, i32
  }
}

module attributes {stable_mosaic.version = 11 : i64} {
  func.func @_conv_bn_pool_kernel(%arg0: i32, %arg1: memref<128x250xbf16, #tpu.memory_space<vmem>>, %arg2: memref<250x128xbf16, #tpu.memory_space<vmem>>, %arg3: memref<1x128xf32, #tpu.memory_space<vmem>>, %arg4: memref<32x128xbf16, #tpu.memory_space<vmem>>) attributes {dimension_semantics = [#tpu.dimension_semantics<parallel>], iteration_bounds = array<i64: 1>, scalar_prefetch = 0 : i64, scratch_operands = 0 : i64, tpu.core_type = #tpu.core_type<tc>, window_params = [{transform_indices = @transform_0, window_bounds = array<i64: 128, 250>}, {pipeline_mode = #tpu.pipeline_mode<synchronous>, transform_indices = @transform_1, window_bounds = array<i64: 250, 128>}, {pipeline_mode = #tpu.pipeline_mode<synchronous>, transform_indices = @transform_2, window_bounds = array<i64: 1, 128>}, {transform_indices = @transform_3, window_bounds = array<i64: 32, 128>}]} {
    %c0 = arith.constant 0 : index
    %c0_0 = arith.constant 0 : index
    %0 = vector.load %arg1[%c0, %c0_0] : memref<128x250xbf16, #tpu.memory_space<vmem>>, vector<128x250xbf16>
    %c0_1 = arith.constant 0 : index
    %c0_2 = arith.constant 0 : index
    %1 = vector.load %arg2[%c0_1, %c0_2] : memref<250x128xbf16, #tpu.memory_space<vmem>>, vector<250x128xbf16>
    %cst = arith.constant dense<0.000000e+00> : vector<128x128xf32>
    %2 = tpu.matmul %0, %1, %cst {dimension_numbers = #tpu.dot_dimension_numbers<[1], [0], [0], [1], [0, 0, 1, 1], [], []>} : vector<128x250xbf16>, vector<250x128xbf16>, vector<128x128xf32> -> vector<128x128xf32>
    %3 = vector.extract_strided_slice %2 {offsets = [0, 0], sizes = [32, 128], strides = [1, 1]} : vector<128x128xf32> to vector<32x128xf32>
    %4 = vector.extract_strided_slice %2 {offsets = [32, 0], sizes = [32, 128], strides = [1, 1]} : vector<128x128xf32> to vector<32x128xf32>
    %5 = arith.maximumf %3, %4 : vector<32x128xf32>
    %6 = vector.extract_strided_slice %2 {offsets = [64, 0], sizes = [32, 128], strides = [1, 1]} : vector<128x128xf32> to vector<32x128xf32>
    %7 = vector.extract_strided_slice %2 {offsets = [96, 0], sizes = [32, 128], strides = [1, 1]} : vector<128x128xf32> to vector<32x128xf32>
    %8 = arith.maximumf %6, %7 : vector<32x128xf32>
    %9 = arith.maximumf %5, %8 : vector<32x128xf32>
    %c0_3 = arith.constant 0 : index
    %c0_4 = arith.constant 0 : index
    %10 = vector.load %arg3[%c0_3, %c0_4] : memref<1x128xf32, #tpu.memory_space<vmem>>, vector<1x128xf32>
    %11 = vector.broadcast %10 : vector<1x128xf32> to vector<32x128xf32>
    %12 = arith.addf %9, %11 : vector<32x128xf32>
    %13 = arith.truncf %12 : vector<32x128xf32> to vector<32x128xbf16>
    %c0_5 = arith.constant 0 : index
    %c0_6 = arith.constant 0 : index
    %14 = vector.load %arg4[%c0_5, %c0_6] : memref<32x128xbf16, #tpu.memory_space<vmem>>, vector<32x128xbf16>
    tpu.vector_store %arg4[%c0_5, %c0_6], %13 {strides = array<i32>} : memref<32x128xbf16, #tpu.memory_space<vmem>>, vector<32x128xbf16>,
    return
  }
  func.func @transform_0(%arg0: i32) -> (i32, i32) {
    %c0_i32 = arith.constant 0 : i32
    %c0_i32_0 = arith.constant 0 : i32
    return %arg0, %c0_i32 : i32, i32
  }
  func.func @transform_1(%arg0: i32) -> (i32, i32) {
    %c0_i32 = arith.constant 0 : i32
    %c0_i32_0 = arith.constant 0 : i32
    %c0_i32_1 = arith.constant 0 : i32
    return %c0_i32, %c0_i32_0 : i32, i32
  }
  func.func @transform_2(%arg0: i32) -> (i32, i32) {
    %c0_i32 = arith.constant 0 : i32
    %c0_i32_0 = arith.constant 0 : i32
    %c0_i32_1 = arith.constant 0 : i32
    return %c0_i32, %c0_i32_0 : i32, i32
  }
  func.func @transform_3(%arg0: i32) -> (i32, i32) {
    %c0_i32 = arith.constant 0 : i32
    %c0_i32_0 = arith.constant 0 : i32
    return %arg0, %c0_i32 : i32, i32
  }
}

</mosaic_0001>

<bundles_post_ra>
// kernel: net_conv_part.2
= control target key start
LH: loop header
LB: loop body
LE: loop exit
PB: predicated region body
PF: predicated region fallthrough
CT: control target
= control target key end

     0   :  { %vm751_vm0 = vcmask 1043456   ;;  %vm752_vm1 = vcmask 1044480   ;;  %vm534_vm2 = vcmask 203776   ;;  %v2365_v1 = vmov 65535   ;;  %s2991_s1 = inlined_call_operand.vmem [shape: bf16[25,128], index: 1, kind: input, shape index: {}]   ;;  %s2992_s0 = inlined_call_operand.vmem [shape: bf16[1152,25], index: 0, kind: input, shape index: {}]   ;;  %s2993_s2 = inlined_call_operand.vmem [shape: f32[1,128], index: 2, kind: input, shape index: {}]   ;;  %s2994_s3 = inlined_call_operand.vmem [shape: bf16[288,128], index: 3, kind: output, shape index: {}]  }
   0x1   :  { %v2291_v0 = vld [vmem:[%s2991_s1] sm:$0xff]   ;;  %v753_v2 = vsel %vm751_vm0, 4294967295, %v2365_v1  ;;  %v2292_v3 = vld [vmem:[%s2991_s1 + $0x8] sm:$0x1f]   ;;  %v2297_v10 = vld [vmem:[%s2992_s0 + $0x10] sm:$0xff]  }
   0x2   :  { %2138 = vmatprep.subr.bf16.mxu0 %v2291_v0  ;;  %2286 = vmatprep.subr.bf16.mxu1 %v2291_v0  ;;  %v754_v4 = vsel %vm752_vm1, %v753_v2, 0  ;;  %v2293_v5 = vld [vmem:[%s2992_s0] sm:$0xff]   ;;  %v2295_v8 = vld [vmem:[%s2992_s0 + $0x8] sm:$0xff]   ;;  %v2298_v11 = vld [vmem:[%s2992_s0 + $0x130] sm:$0xff]  }
   0x3   :  { %2139 = vmatpush3.bf16.msra.mxu0 %v2291_v0  ;;  %2288 = vmatpush3.bf16.msra.mxu1 %v2291_v0  ;;  %v756_v6 = vand.u32 %v2292_v3, %v754_v4  ;;  %v2294_v7 = vld [vmem:[%s2992_s0 + $0x120] sm:$0xff]   ;;  %v2296_v9 = vld [vmem:[%s2992_s0 + $0x128] sm:$0xff]   ;;  %v2299_v12 = vld [vmem:[%s2992_s0 + $0x18] sm:$0xff]  }
   0x4   :  { %2142 = vmatprep.mubr.msk.bf16.mxu0 %vm534_vm2, %v2293_v5  ;;  %2214 = vmatprep.mubr.msk.bf16.mxu1 %vm534_vm2, %v2294_v7  ;;  %v2300_v13 = vld [vmem:[%s2992_s0 + $0x138] sm:$0xff]   ;;  %v2301_v14 = vld [vmem:[%s2992_s0 + $0x20] sm:$0xff]   ;;  %v2303_v16 = vld [vmem:[%s2992_s0 + $0x28] sm:$0xff]  }
   0x5   :  { %2140 = vmatprep.subr.bf16.mxu0 %v756_v6  ;;  %2287 = vmatprep.subr.bf16.mxu1 %v756_v6  ;;  %v2302_v15 = vld [vmem:[%s2992_s0 + $0x140] sm:$0xff]   ;;  %v2304_v17 = vld [vmem:[%s2992_s0 + $0x148] sm:$0xff]   ;;  %v2305_v18 = vld [vmem:[%s2992_s0 + $0x30] sm:$0xff]  }
   0x6   :  { %v2306_v19 = vld [vmem:[%s2992_s0 + $0x150] sm:$0xff]   ;;  %v2307_v20 = vld [vmem:[%s2992_s0 + $0x38] sm:$0xff]   ;;  %v2309_v22 = vld [vmem:[%s2992_s0 + $0x40] sm:$0xff]  }
   0x7   :  { %2141 = vmatpush3.bf16.msra.mxu0 %v756_v6  ;;  %2289 = vmatpush3.bf16.msra.mxu1 %v756_v6  ;;  %v2308_v21 = vld [vmem:[%s2992_s0 + $0x158] sm:$0xff]   ;;  %v2310_v23 = vld [vmem:[%s2992_s0 + $0x160] sm:$0xff]   ;;  %v2311_v24 = vld [vmem:[%s2992_s0 + $0x48] sm:$0xff]  }
   0x8   :  { %v2312_v25 = vld [vmem:[%s2992_s0 + $0x168] sm:$0xff]   ;;  %v2313_v26 = vld [vmem:[%s2992_s0 + $0x50] sm:$0xff]   ;;  %v2315_v28 = vld [vmem:[%s2992_s0 + $0x58] sm:$0xff]  }
   0x9   :  { %v2314_v27 = vld [vmem:[%s2992_s0 + $0x170] sm:$0xff]   ;;  %v2316_v29 = vld [vmem:[%s2992_s0 + $0x178] sm:$0xff]   ;;  %v2317_v30 = vld [vmem:[%s2992_s0 + $0x60] sm:$0xff]  }
   0xa   :  { %2143 = vmatmul.mubr.msk.bf16.vlgmr.msra.gmra.mrb[0].mxu0 %vm534_vm2, %v2295_v8  ;;  %2215 = vmatmul.mubr.msk.bf16.vlgmr.msra.gmra.mrb[0].mxu1 %vm534_vm2, %v2296_v9  ;;  %v2318_v31 = vld [vmem:[%s2992_s0 + $0x180] sm:$0xff]   ;;  %v2319_v32 = vld [vmem:[%s2992_s0 + $0x68] sm:$0xff]   ;;  %v2321_v34 = vld [vmem:[%s2992_s0 + $0x70] sm:$0xff]  }
   0xb   :  { %2146 = vmatprep.mubr.msk.bf16.mxu0 %vm534_vm2, %v2297_v10  ;;  %2218 = vmatprep.mubr.msk.bf16.mxu1 %vm534_vm2, %v2298_v11  ;;  %v2320_v33 = vld [vmem:[%s2992_s0 + $0x188] sm:$0xff]   ;;  %v2322_v35 = vld [vmem:[%s2992_s0 + $0x190] sm:$0xff]   ;;  %v2323_v36 = vld [vmem:[%s2992_s0 + $0x78] sm:$0xff]  }
   0xc   :  { %v2324_v37 = vld [vmem:[%s2992_s0 + $0x198] sm:$0xff]   ;;  %v2325_v38 = vld [vmem:[%s2992_s0 + $0x80] sm:$0xff]   ;;  %v2327_v40 = vld [vmem:[%s2992_s0 + $0x88] sm:$0xff]  }
   0xd   :  { %v2326_v39 = vld [vmem:[%s2992_s0 + $0x1a0] sm:$0xff]   ;;  %v2328_v41 = vld [vmem:[%s2992_s0 + $0x1a8] sm:$0xff]   ;;  %v2329_v42 = vld [vmem:[%s2992_s0 + $0x90] sm:$0xff]  }
   0xe   :  { %v2330_v43 = vld [vmem:[%s2992_s0 + $0x1b0] sm:$0xff]   ;;  %v2331_v44 = vld [vmem:[%s2992_s0 + $0x98] sm:$0xff]   ;;  %v2333_v46 = vld [vmem:[%s2992_s0 + $0xa0] sm:$0xff]  }
   0xf   :  { %v2332_v45 = vld [vmem:[%s2992_s0 + $0x1b8] sm:$0xff]   ;;  %v2334_v47 = vld [vmem:[%s2992_s0 + $0x1c0] sm:$0xff]   ;;  %v2335_v48 = vld [vmem:[%s2992_s0 + $0xa8] sm:$0xff]  }
  0x10   :  { %v2336_v49 = vld [vmem:[%s2992_s0 + $0x1c8] sm:$0xff]   ;;  %v2337_v50 = vld [vmem:[%s2992_s0 + $0xb0] sm:$0xff]   ;;  %v2339_v52 = vld [vmem:[%s2992_s0 + $0xb8] sm:$0xff]  }
  0x11   :  { %v2338_v51 = vld [vmem:[%s2992_s0 + $0x1d0] sm:$0xff]   ;;  %v2340_v53 = vld [vmem:[%s2992_s0 + $0x1d8] sm:$0xff]   ;;  %v2341_v54 = vld [vmem:[%s2992_s0 + $0xc0] sm:$0xff]  }
  0x12   :  { %2147 = vmatmul.mubr.msk.bf16.gmra.mrb[4].mxu0 %vm534_vm2, %v2299_v12  ;;  %2219 = vmatmul.mubr.msk.bf16.gmra.mrb[4].mxu1 %vm534_vm2, %v2300_v13  ;;  %v2342_v55 = vld [vmem:[%s2992_s0 + $0x1e0] sm:$0xff]   ;;  %v2343_v56 = vld [vmem:[%s2992_s0 + $0xc8] sm:$0xff]   ;;  %v2345_v58 = vld [vmem:[%s2992_s0 + $0xd0] sm:$0xff]  }
  0x13   :  { %2150 = vmatprep.mubr.msk.bf16.mxu0 %vm534_vm2, %v2301_v14  ;;  %2222 = vmatprep.mubr.msk.bf16.mxu1 %vm534_vm2, %v2302_v15  ;;  %v2344_v57 = vld [vmem:[%s2992_s0 + $0x1e8] sm:$0xff]   ;;  %v2346_v59 = vld [vmem:[%s2992_s0 + $0x1f0] sm:$0xff]   ;;  %v2347_v60 = vld [vmem:[%s2992_s0 + $0xd8] sm:$0xff]  }
  0x14   :  { %v2348_v61 = vld [vmem:[%s2992_s0 + $0x1f8] sm:$0xff]   ;;  %v2349_v62 = vld [vmem:[%s2992_s0 + $0xe0] sm:$0xff]   ;;  %v2351_v0 = vld [vmem:[%s2992_s0 + $0xe8] sm:$0xff]  }
  0x15   :  { %v2350_v63 = vld [vmem:[%s2992_s0 + $0x200] sm:$0xff]   ;;  %v2352_v1 = vld [vmem:[%s2992_s0 + $0x208] sm:$0xff]   ;;  %v2353_v2 = vld [vmem:[%s2992_s0 + $0xf0] sm:$0xff]  }
  0x16   :  { %v2354_v3 = vld [vmem:[%s2992_s0 + $0x210] sm:$0xff]   ;;  %v2355_v4 = vld [vmem:[%s2992_s0 + $0xf8] sm:$0xff]   ;;  %v2357_v6 = vld [vmem:[%s2992_s0 + $0x100] sm:$0xff]  }
  0x17   :  { %v2356_v5 = vld [vmem:[%s2992_s0 + $0x218] sm:$0xff]   ;;  %v2358_v7 = vld [vmem:[%s2992_s0 + $0x220] sm:$0xff]   ;;  %v2359_v8 = vld [vmem:[%s2992_s0 + $0x108] sm:$0xff]  }
  0x18   :  { %v2360_v9 = vld [vmem:[%s2992_s0 + $0x228] sm:$0xff]   ;;  %v2361_v10 = vld [vmem:[%s2992_s0 + $0x110] sm:$0xff]   ;;  %v2363_v12 = vld [vmem:[%s2992_s0 + $0x118] sm:$0xff]  }
  0x19   :  { %v2362_v11 = vld [vmem:[%s2992_s0 + $0x230] sm:$0xff]   ;;  %v2364_v13 = vld [vmem:[%s2992_s0 + $0x238] sm:$0xff]  }
  0x1a   :  { %2151 = vmatmul.mubr.msk.bf16.gmra.mrb[8].mxu0 %vm534_vm2, %v2303_v16  ;;  %2223 = vmatmul.mubr.msk.bf16.gmra.mrb[8].mxu1 %vm534_vm2, %v2304_v17 }
  0x1b   :  { %2154 = vmatprep.mubr.msk.bf16.mxu0 %vm534_vm2, %v2305_v18  ;;  %2226 = vmatprep.mubr.msk.bf16.mxu1 %vm534_vm2, %v2306_v19 }
  0x22   :  { %2155 = vmatmul.mubr.msk.bf16.gmra.mrb[12].mxu0 %vm534_vm2, %v2307_v20  ;;  %2227 = vmatmul.mubr.msk.bf16.gmra.mrb[12].mxu1 %vm534_vm2, %v2308_v21 }
  0x23   :  { %2158 = vmatprep.mubr.msk.bf16.mxu0 %vm534_vm2, %v2309_v22  ;;  %2230 = vmatprep.mubr.msk.bf16.mxu1 %vm534_vm2, %v2310_v23 }
  0x2a   :  { %2159 = vmatmul.mubr.msk.bf16.gmra.mrb[16].mxu0 %vm534_vm2, %v2311_v24  ;;  %2231 = vmatmul.mubr.msk.bf16.gmra.mrb[16].mxu1 %vm534_vm2, %v2312_v25 }
  0x2b   :  { %2162 = vmatprep.mubr.msk.bf16.mxu0 %vm534_vm2, %v2313_v26  ;;  %2234 = vmatprep.mubr.msk.bf16.mxu1 %vm534_vm2, %v2314_v27 }
  0x32   :  { %2163 = vmatmul.mubr.msk.bf16.gmra.mrb[20].mxu0 %vm534_vm2, %v2315_v28  ;;  %2235 = vmatmul.mubr.msk.bf16.gmra.mrb[20].mxu1 %vm534_vm2, %v2316_v29 }
  0x33   :  { %2166 = vmatprep.mubr.msk.bf16.mxu0 %vm534_vm2, %v2317_v30  ;;  %2238 = vmatprep.mubr.msk.bf16.mxu1 %vm534_vm2, %v2318_v31 }
  0x3a   :  { %2167 = vmatmul.mubr.msk.bf16.gmra.mrb[24].mxu0 %vm534_vm2, %v2319_v32  ;;  %2239 = vmatmul.mubr.msk.bf16.gmra.mrb[24].mxu1 %vm534_vm2, %v2320_v33 }
  0x3b   :  { %2170 = vmatprep.mubr.msk.bf16.mxu0 %vm534_vm2, %v2321_v34  ;;  %2242 = vmatprep.mubr.msk.bf16.mxu1 %vm534_vm2, %v2322_v35 }
  0x42   :  { %2171 = vmatmul.mubr.msk.bf16.gmra.mrb[28].mxu0 %vm534_vm2, %v2323_v36  ;;  %2243 = vmatmul.mubr.msk.bf16.gmra.mrb[28].mxu1 %vm534_vm2, %v2324_v37 }
  0x43   :  { %2174 = vmatprep.mubr.msk.bf16.mxu0 %vm534_vm2, %v2325_v38  ;;  %2246 = vmatprep.mubr.msk.bf16.mxu1 %vm534_vm2, %v2326_v39 }
  0x4a   :  { %2175 = vmatmul.mubr.msk.bf16.gmra.mrb[32].mxu0 %vm534_vm2, %v2327_v40  ;;  %2247 = vmatmul.mubr.msk.bf16.gmra.mrb[32].mxu1 %vm534_vm2, %v2328_v41 }
  0x4b   :  { %2178 = vmatprep.mubr.msk.bf16.mxu0 %vm534_vm2, %v2329_v42  ;;  %2250 = vmatprep.mubr.msk.bf16.mxu1 %vm534_vm2, %v2330_v43 }
  0x52   :  { %2179 = vmatmul.mubr.msk.bf16.gmra.mrb[36].mxu0 %vm534_vm2, %v2331_v44  ;;  %2251 = vmatmul.mubr.msk.bf16.gmra.mrb[36].mxu1 %vm534_vm2, %v2332_v45 }
  0x53   :  { %2182 = vmatprep.mubr.msk.bf16.mxu0 %vm534_vm2, %v2333_v46  ;;  %2254 = vmatprep.mubr.msk.bf16.mxu1 %vm534_vm2, %v2334_v47 }
  0x5a   :  { %2183 = vmatmul.mubr.msk.bf16.gmra.mrb[40].mxu0 %vm534_vm2, %v2335_v48  ;;  %2255 = vmatmul.mubr.msk.bf16.gmra.mrb[40].mxu1 %vm534_vm2, %v2336_v49 }
  0x5b   :  { %2186 = vmatprep.mubr.msk.bf16.mxu0 %vm534_vm2, %v2337_v50  ;;  %2258 = vmatprep.mubr.msk.bf16.mxu1 %vm534_vm2, %v2338_v51 }
  0x62   :  { %2187 = vmatmul.mubr.msk.bf16.gmra.mrb[44].mxu0 %vm534_vm2, %v2339_v52  ;;  %2259 = vmatmul.mubr.msk.bf16.gmra.mrb[44].mxu1 %vm534_vm2, %v2340_v53 }
  0x63   :  { %2190 = vmatprep.mubr.msk.bf16.mxu0 %vm534_vm2, %v2341_v54  ;;  %2262 = vmatprep.mubr.msk.bf16.mxu1 %vm534_vm2, %v2342_v55 }
  0x6a   :  { %2191 = vmatmul.mubr.msk.bf16.gmra.mrb[48].mxu0 %vm534_vm2, %v2343_v56  ;;  %2263 = vmatmul.mubr.msk.bf16.gmra.mrb[48].mxu1 %vm534_vm2, %v2344_v57 }
  0x6b   :  { %2194 = vmatprep.mubr.msk.bf16.mxu0 %vm534_vm2, %v2345_v58  ;;  %2266 = vmatprep.mubr.msk.bf16.mxu1 %vm534_vm2, %v2346_v59 }
  0x72   :  { %2195 = vmatmul.mubr.msk.bf16.gmra.mrb[52].mxu0 %vm534_vm2, %v2347_v60  ;;  %2267 = vmatmul.mubr.msk.bf16.gmra.mrb[52].mxu1 %vm534_vm2, %v2348_v61 }
  0x73   :  { %2198 = vmatprep.mubr.msk.bf16.mxu0 %vm534_vm2, %v2349_v62  ;;  %2270 = vmatprep.mubr.msk.bf16.mxu1 %vm534_vm2, %v2350_v63 }
  0x7a   :  { %2199 = vmatmul.mubr.msk.bf16.gmra.mrb[56].mxu0 %vm534_vm2, %v2351_v0  ;;  %2271 = vmatmul.mubr.msk.bf16.gmra.mrb[56].mxu1 %vm534_vm2, %v2352_v1 }
  0x7b   :  { %2202 = vmatprep.mubr.msk.bf16.mxu0 %vm534_vm2, %v2353_v2  ;;  %2274 = vmatprep.mubr.msk.bf16.mxu1 %vm534_vm2, %v2354_v3 }
  0x82   :  { %2203 = vmatmul.mubr.msk.bf16.gmra.mrb[60].mxu0 %vm534_vm2, %v2355_v4  ;;  %2275 = vmatmul.mubr.msk.bf16.gmra.mrb[60].mxu1 %vm534_vm2, %v2356_v5 }
  0x83   :  { %2206 = vmatprep.mubr.msk.bf16.mxu0 %vm534_vm2, %v2357_v6  ;;  %2278 = vmatprep.mubr.msk.bf16.mxu1 %vm534_vm2, %v2358_v7 }
  0x8a   :  { %2207 = vmatmul.mubr.msk.bf16.gmra.mrb[64].mxu0 %vm534_vm2, %v2359_v8  ;;  %2279 = vmatmul.mubr.msk.bf16.gmra.mrb[64].mxu1 %vm534_vm2, %v2360_v9 }
  0x8b   :  { %2210 = vmatprep.mubr.msk.bf16.mxu0 %vm534_vm2, %v2361_v10  ;;  %2282 = vmatprep.mubr.msk.bf16.mxu1 %vm534_vm2, %v2362_v11 }
  0x92   :  { %2211 = vmatmul.mubr.msk.bf16.gmra.mrb[68].mxu0 %vm534_vm2, %v2363_v12  ;;  %2283 = vmatmul.mubr.msk.bf16.gmra.mrb[68].mxu1 %vm534_vm2, %v2364_v13 }
  0xdd   :  { %v2680_v14 = vpop.f32.mrb[0].mxu0  ;;  %v2682_v15 = vpop.f32.mrb[0].mxu1 }
  0xde   :  { %v2684_v16 = vpop.f32.mrb[1].mxu0  ;;  %v2686_v17 = vpop.f32.mrb[1].mxu1 }
  0xdf   :  { %v2688_v18 = vpop.f32.mrb[2].mxu0  ;;  %v2690_v19 = vpop.f32.mrb[2].mxu1 }
  0xe0   :  { %v2692_v20 = vpop.f32.mrb[3].mxu0  ;;  %v2694_v21 = vpop.f32.mrb[3].mxu1 }
  0xe5   :  { %v2696_v22 = vpop.f32.mrb[4].mxu0  ;;  %v2698_v23 = vpop.f32.mrb[4].mxu1 }
  0xe6   :  { %v2700_v24 = vpop.f32.mrb[5].mxu0  ;;  %v2702_v25 = vpop.f32.mrb[5].mxu1 }
  0xe7   :  { %v2704_v26 = vpop.f32.mrb[6].mxu0  ;;  %v2706_v27 = vpop.f32.mrb[6].mxu1 }
  0xe8   :  { %v2708_v28 = vpop.f32.mrb[7].mxu0  ;;  %v2710_v29 = vpop.f32.mrb[7].mxu1 }
  0xed   :  { %v2712_v30 = vpop.f32.mrb[8].mxu0  ;;  %v2714_v31 = vpop.f32.mrb[8].mxu1 }
  0xee   :  { %v2716_v32 = vpop.f32.mrb[9].mxu0  ;;  %v2718_v33 = vpop.f32.mrb[9].mxu1 }
  0xef   :  { %v2720_v34 = vpop.f32.mrb[10].mxu0  ;;  %v2722_v35 = vpop.f32.mrb[10].mxu1 }
  0xf0   :  { %v2724_v36 = vpop.f32.mrb[11].mxu0  ;;  %v2726_v37 = vpop.f32.mrb[11].mxu1 }
  0xf5   :  { %v2728_v38 = vpop.f32.mrb[12].mxu0  ;;  %v2730_v39 = vpop.f32.mrb[12].mxu1 }
  0xf6   :  { %v2732_v40 = vpop.f32.mrb[13].mxu0  ;;  %v2734_v41 = vpop.f32.mrb[13].mxu1 }
  0xf7   :  { %v2736_v42 = vpop.f32.mrb[14].mxu0  ;;  %v2738_v43 = vpop.f32.mrb[14].mxu1 }
  0xf8   :  { %v2740_v44 = vpop.f32.mrb[15].mxu0  ;;  %v2742_v45 = vpop.f32.mrb[15].mxu1 }
  0xfd   :  { %v2744_v46 = vpop.f32.mrb[16].mxu0  ;;  %v2746_v47 = vpop.f32.mrb[16].mxu1 }
  0xfe   :  { %v2748_v48 = vpop.f32.mrb[17].mxu0  ;;  %v2750_v49 = vpop.f32.mrb[17].mxu1 }
  0xff   :  { %v2752_v50 = vpop.f32.mrb[18].mxu0  ;;  %v2754_v51 = vpop.f32.mrb[18].mxu1 }
 0x100   :  { %v2756_v52 = vpop.f32.mrb[19].mxu0  ;;  %v2758_v53 = vpop.f32.mrb[19].mxu1 }
 0x105   :  { %v2760_v54 = vpop.f32.mrb[20].mxu0  ;;  %v2762_v55 = vpop.f32.mrb[20].mxu1 }
 0x106   :  { %v2764_v56 = vpop.f32.mrb[21].mxu0  ;;  %v2766_v57 = vpop.f32.mrb[21].mxu1 }
 0x107   :  { %v2768_v58 = vpop.f32.mrb[22].mxu0  ;;  %v2770_v59 = vpop.f32.mrb[22].mxu1 }
 0x108   :  { %v2772_v60 = vpop.f32.mrb[23].mxu0  ;;  %v2774_v61 = vpop.f32.mrb[23].mxu1 }
 0x109   :  { %2995 = vst [vmem:[#allocation2_spill] sm:$0xff] %v2774_v61 }
 0x10d   :  { %v2776_v62 = vpop.f32.mrb[24].mxu0  ;;  %v2778_v63 = vpop.f32.mrb[24].mxu1 }
 0x10e   :  { %2996 = vst [vmem:[#allocation3_spill] sm:$0xff] %v2776_v62  ;;  %2997 = vst [vmem:[#allocation4_spill] sm:$0xff] %v2778_v63  ;;  %v2780_v0 = vpop.f32.mrb[25].mxu0  ;;  %v2782_v1 = vpop.f32.mrb[25].mxu1 }
 0x10f   :  { %2998 = vst [vmem:[#allocation5_spill] sm:$0xff] %v2780_v0  ;;  %2999 = vst [vmem:[#allocation6_spill] sm:$0xff] %v2782_v1  ;;  %v2784_v2 = vpop.f32.mrb[26].mxu0  ;;  %v2786_v3 = vpop.f32.mrb[26].mxu1 }
 0x110   :  { %3000 = vst [vmem:[#allocation7_spill] sm:$0xff] %v2784_v2  ;;  %3001 = vst [vmem:[#allocation8_spill] sm:$0xff] %v2786_v3  ;;  %v2788_v4 = vpop.f32.mrb[27].mxu0  ;;  %v2790_v5 = vpop.f32.mrb[27].mxu1 }
 0x111   :  { %3002 = vst [vmem:[#allocation9_spill] sm:$0xff] %v2788_v4  ;;  %3003 = vst [vmem:[#allocation10_spill] sm:$0xff] %v2790_v5 }
 0x115   :  { %v2792_v6 = vpop.f32.mrb[28].mxu0  ;;  %v2794_v7 = vpop.f32.mrb[28].mxu1 }
 0x116   :  { %3004 = vst [vmem:[#allocation11_spill] sm:$0xff] %v2792_v6  ;;  %3005 = vst [vmem:[#allocation12_spill] sm:$0xff] %v2794_v7  ;;  %v2796_v8 = vpop.f32.mrb[29].mxu0  ;;  %v2798_v9 = vpop.f32.mrb[29].mxu1 }
 0x117   :  { %3006 = vst [vmem:[#allocation13_spill] sm:$0xff] %v2796_v8  ;;  %3007 = vst [vmem:[#allocation14_spill] sm:$0xff] %v2798_v9  ;;  %v2800_v10 = vpop.f32.mrb[30].mxu0  ;;  %v2802_v11 = vpop.f32.mrb[30].mxu1 }
 0x118   :  { %3008 = vst [vmem:[#allocation15_spill] sm:$0xff] %v2800_v10  ;;  %3009 = vst [vmem:[#allocation16_spill] sm:$0xff] %v2802_v11  ;;  %v2804_v12 = vpop.f32.mrb[31].mxu0  ;;  %v2806_v13 = vpop.f32.mrb[31].mxu1 }
 0x119   :  { %3010 = vst [vmem:[#allocation17_spill] sm:$0xff] %v2804_v12  ;;  %3011 = vst [vmem:[#allocation18_spill] sm:$0xff] %v2806_v13 }
 0x11d   :  { %v2808_v3 = vpop.f32.mrb[32].mxu0  ;;  %v2810_v4 = vpop.f32.mrb[32].mxu1 }
 0x11e   :  { %3012 = vst [vmem:[#allocation19_spill] sm:$0xff] %v2808_v3  ;;  %3013 = vst [vmem:[#allocation20_spill] sm:$0xff] %v2810_v4  ;;  %v2812_v5 = vpop.f32.mrb[33].mxu0  ;;  %v2814_v6 = vpop.f32.mrb[33].mxu1 }
 0x11f   :  { %3014 = vst [vmem:[#allocation21_spill] sm:$0xff] %v2812_v5  ;;  %3015 = vst [vmem:[#allocation22_spill] sm:$0xff] %v2814_v6  ;;  %v2816_v7 = vpop.f32.mrb[34].mxu0  ;;  %v2818_v8 = vpop.f32.mrb[34].mxu1  ;;  %v2829_v6 = vld [vmem:[%s2993_s2] ss:$0 sm:$0xff] }
 0x120   :  { %3016 = vst [vmem:[#allocation23_spill] sm:$0xff] %v2816_v7  ;;  %3017 = vst [vmem:[#allocation24_spill] sm:$0xff] %v2818_v8  ;;  %v2820_v9 = vpop.f32.mrb[35].mxu0  ;;  %v2822_v10 = vpop.f32.mrb[35].mxu1 }
 0x121   :  { %3018 = vst [vmem:[#allocation25_spill] sm:$0xff] %v2820_v9  ;;  %3019 = vst [vmem:[#allocation26_spill] sm:$0xff] %v2822_v10 }
 0x125   :  { %v2180_v11 = vpop.f32.mrb[36].mxu0  ;;  %v2252_v12 = vpop.f32.mrb[36].mxu1 }
 0x126   :  { %v1369_v13 = vmax.f32 %v2680_v14, %v2180_v11  ;;  %v1405_v3 = vmax.f32 %v2682_v15, %v2252_v12  ;;  %v936_v2 = vpop.f32.mrb[37].mxu0  ;;  %v1224_v4 = vpop.f32.mrb[37].mxu1 }
 0x127   :  { %v1367_v7 = vmax.f32 %v2684_v16, %v936_v2  ;;  %v1403_v8 = vmax.f32 %v2686_v17, %v1224_v4  ;;  %v2181_v9 = vpop.f32.mrb[38].mxu0  ;;  %v2253_v5 = vpop.f32.mrb[38].mxu1 }
 0x128   :  { %v1441_v10 = vmax.f32 %v1369_v13, %v1405_v3  ;;  %v1370_v1 = vmax.f32 %v2688_v18, %v2181_v9  ;;  %v1406_v14 = vmax.f32 %v2690_v19, %v2253_v5  ;;  %v939_v11 = vpop.f32.mrb[39].mxu0  ;;  %v1227_v15 = vpop.f32.mrb[39].mxu1 }
 0x129   :  { %v1439_v12 = vmax.f32 %v1367_v7, %v1403_v8  ;;  %v1368_v0 = vmax.f32 %v2692_v20, %v939_v11  ;;  %v1404_v63 = vmax.f32 %v2694_v21, %v1227_v15 }
 0x12a   :  { %v1484_v62 = vadd.f32 %v2829_v6, %v1441_v10  ;;  %v1442_v61 = vmax.f32 %v1370_v1, %v1406_v14 }
 0x12b   :  { %v1482_v16 = vadd.f32 %v2829_v6, %v1439_v12  ;;  %v1440_v17 = vmax.f32 %v1368_v0, %v1404_v63 }
 0x12c   :  { %v1485_v2 = vadd.f32 %v2829_v6, %v1442_v61  ;;  %v1520_v19 = vmax.f32 %v1484_v62, 0.0 }
 0x12d   :  { %v1483_v3 = vadd.f32 %v2829_v6, %v1440_v17  ;;  %v2184_v18 = vpop.f32.mrb[40].mxu0  ;;  %v2256_v4 = vpop.f32.mrb[40].mxu1  ;;  %v1518_v9 = vmax.f32 %v1482_v16, 0.0 }
 0x12e   :  { %v1521_v5 = vmax.f32 %v1485_v2, 0.0  ;;  %v1373_v7 = vmax.f32 %v2696_v22, %v2184_v18  ;;  %v1409_v20 = vmax.f32 %v2698_v23, %v2256_v4  ;;  %v952_v8 = vpop.f32.mrb[41].mxu0  ;;  %v1240_v21 = vpop.f32.mrb[41].mxu1 }
 0x12f   :  { %v1519_v10 = vmax.f32 %v1483_v3, 0.0  ;;  %v1371_v1 = vmax.f32 %v2700_v24, %v952_v8  ;;  %v1407_v63 = vmax.f32 %v2702_v25, %v1240_v21  ;;  %v2185_v0 = vpop.f32.mrb[42].mxu0  ;;  %v2257_v61 = vpop.f32.mrb[42].mxu1 }
 0x130   :  { %v1965_v13 = vpack.c.bf16 %v1521_v5, %v1520_v19  ;;  %v1445_v14 = vmax.f32 %v1373_v7, %v1409_v20  ;;  %v1374_v11 = vmax.f32 %v2704_v26, %v2185_v0  ;;  %v1410_v62 = vmax.f32 %v2706_v27, %v2257_v61  ;;  %v955_v15 = vpop.f32.mrb[43].mxu0  ;;  %v1243_v22 = vpop.f32.mrb[43].mxu1 }
 0x131   :  { %v1960_v12 = vpack.c.bf16 %v1519_v10, %v1518_v9  ;;  %v1443_v23 = vmax.f32 %v1371_v1, %v1407_v63  ;;  %v1372_v17 = vmax.f32 %v2708_v28, %v955_v15  ;;  %v1408_v16 = vmax.f32 %v2710_v29, %v1243_v22 }
 0x132   :  { %2047 = vst [vmem:[%s2994_s3 + $0x8] sm:$0xff] %v1965_v13   ;;  %v1488_v24 = vadd.f32 %v2829_v6, %v1445_v14  ;;  %v1446_v25 = vmax.f32 %v1374_v11, %v1410_v62 }
 0x133   :  { %1961 = vst [vmem:[%s2994_s3] sm:$0xff] %v1960_v12   ;;  %v1486_v26 = vadd.f32 %v2829_v6, %v1443_v23  ;;  %v1444_v27 = vmax.f32 %v1372_v17, %v1408_v16 }
 0x134   :  { %v1489_v2 = vadd.f32 %v2829_v6, %v1446_v25  ;;  %v1524_v18 = vmax.f32 %v1488_v24, 0.0 }
 0x135   :  { %v1487_v28 = vadd.f32 %v2829_v6, %v1444_v27  ;;  %v2188_v3 = vpop.f32.mrb[44].mxu0  ;;  %v2260_v29 = vpop.f32.mrb[44].mxu1  ;;  %v1522_v8 = vmax.f32 %v1486_v26, 0.0 }
 0x136   :  { %v1525_v4 = vmax.f32 %v1489_v2, 0.0  ;;  %v1377_v19 = vmax.f32 %v2712_v30, %v2188_v3  ;;  %v1413_v5 = vmax.f32 %v2714_v31, %v2260_v29  ;;  %v968_v7 = vpop.f32.mrb[45].mxu0  ;;  %v1256_v20 = vpop.f32.mrb[45].mxu1 }
 0x137   :  { %v1523_v21 = vmax.f32 %v1487_v28, 0.0  ;;  %v1375_v9 = vmax.f32 %v2716_v32, %v968_v7  ;;  %v1411_v10 = vmax.f32 %v2718_v33, %v1256_v20  ;;  %v2189_v1 = vpop.f32.mrb[46].mxu0  ;;  %v2261_v63 = vpop.f32.mrb[46].mxu1 }
 0x138   :  { %v1975_v0 = vpack.c.bf16 %v1525_v4, %v1524_v18  ;;  %v1449_v61 = vmax.f32 %v1377_v19, %v1413_v5  ;;  %v1378_v13 = vmax.f32 %v2720_v34, %v2189_v1  ;;  %v1414_v14 = vmax.f32 %v2722_v35, %v2261_v63  ;;  %v971_v11 = vpop.f32.mrb[47].mxu0  ;;  %v1259_v30 = vpop.f32.mrb[47].mxu1 }
 0x139   :  { %v1970_v62 = vpack.c.bf16 %v1523_v21, %v1522_v8  ;;  %v1447_v31 = vmax.f32 %v1375_v9, %v1411_v10  ;;  %v1376_v15 = vmax.f32 %v2724_v36, %v971_v11  ;;  %v1412_v22 = vmax.f32 %v2726_v37, %v1259_v30 }
 0x13a   :  { %2049 = vst [vmem:[%s2994_s3 + $0x18] sm:$0xff] %v1975_v0   ;;  %v1492_v32 = vadd.f32 %v2829_v6, %v1449_v61  ;;  %v1450_v33 = vmax.f32 %v1378_v13, %v1414_v14 }
 0x13b   :  { %2048 = vst [vmem:[%s2994_s3 + $0x10] sm:$0xff] %v1970_v62   ;;  %v1490_v34 = vadd.f32 %v2829_v6, %v1447_v31  ;;  %v1448_v35 = vmax.f32 %v1376_v15, %v1412_v22 }
 0x13c   :  { %v1493_v12 = vadd.f32 %v2829_v6, %v1450_v33  ;;  %v1528_v17 = vmax.f32 %v1492_v32, 0.0 }
 0x13d   :  { %v1491_v36 = vadd.f32 %v2829_v6, %v1448_v35  ;;  %v2192_v23 = vpop.f32.mrb[48].mxu0  ;;  %v2264_v37 = vpop.f32.mrb[48].mxu1  ;;  %v1526_v2 = vmax.f32 %v1490_v34, 0.0 }
 0x13e   :  { %v1529_v16 = vmax.f32 %v1493_v12, 0.0  ;;  %v1381_v24 = vmax.f32 %v2728_v38, %v2192_v23  ;;  %v1417_v25 = vmax.f32 %v2730_v39, %v2264_v37  ;;  %v984_v26 = vpop.f32.mrb[49].mxu0  ;;  %v1272_v27 = vpop.f32.mrb[49].mxu1 }
 0x13f   :  { %v1527_v28 = vmax.f32 %v1491_v36, 0.0  ;;  %v1379_v3 = vmax.f32 %v2732_v40, %v984_v26  ;;  %v1415_v29 = vmax.f32 %v2734_v41, %v1272_v27  ;;  %v2193_v18 = vpop.f32.mrb[50].mxu0  ;;  %v2265_v4 = vpop.f32.mrb[50].mxu1 }
 0x140   :  { %v1985_v19 = vpack.c.bf16 %v1529_v16, %v1528_v17  ;;  %v1453_v5 = vmax.f32 %v1381_v24, %v1417_v25  ;;  %v1382_v7 = vmax.f32 %v2736_v42, %v2193_v18  ;;  %v1418_v20 = vmax.f32 %v2738_v43, %v2265_v4  ;;  %v987_v8 = vpop.f32.mrb[51].mxu0  ;;  %v1275_v38 = vpop.f32.mrb[51].mxu1 }
 0x141   :  { %v1980_v21 = vpack.c.bf16 %v1527_v28, %v1526_v2  ;;  %v1451_v39 = vmax.f32 %v1379_v3, %v1415_v29  ;;  %v1380_v9 = vmax.f32 %v2740_v44, %v987_v8  ;;  %v1416_v10 = vmax.f32 %v2742_v45, %v1275_v38 }
 0x142   :  { %2051 = vst [vmem:[%s2994_s3 + $0x28] sm:$0xff] %v1985_v19   ;;  %v1496_v40 = vadd.f32 %v2829_v6, %v1453_v5  ;;  %v1454_v41 = vmax.f32 %v1382_v7, %v1418_v20 }
 0x143   :  { %2050 = vst [vmem:[%s2994_s3 + $0x20] sm:$0xff] %v1980_v21   ;;  %v1494_v42 = vadd.f32 %v2829_v6, %v1451_v39  ;;  %v1452_v43 = vmax.f32 %v1380_v9, %v1416_v10 }
 0x144   :  { %v1497_v1 = vadd.f32 %v2829_v6, %v1454_v41  ;;  %v1532_v0 = vmax.f32 %v1496_v40, 0.0  ;;  %v3020_v41 = vld [vmem:[#allocation2_spill] sm:$0xff] }
 0x145   :  { %v1495_v44 = vadd.f32 %v2829_v6, %v1452_v43  ;;  %v2196_v63 = vpop.f32.mrb[52].mxu0  ;;  %v2268_v45 = vpop.f32.mrb[52].mxu1  ;;  %v1530_v62 = vmax.f32 %v1494_v42, 0.0 }
 0x146   :  { %v1533_v61 = vmax.f32 %v1497_v1, 0.0  ;;  %v1385_v13 = vmax.f32 %v2744_v46, %v2196_v63  ;;  %v1421_v14 = vmax.f32 %v2746_v47, %v2268_v45  ;;  %v1000_v11 = vpop.f32.mrb[53].mxu0  ;;  %v1288_v30 = vpop.f32.mrb[53].mxu1 }
 0x147   :  { %v1531_v31 = vmax.f32 %v1495_v44, 0.0  ;;  %v1383_v15 = vmax.f32 %v2748_v48, %v1000_v11  ;;  %v1419_v22 = vmax.f32 %v2750_v49, %v1288_v30  ;;  %v2197_v32 = vpop.f32.mrb[54].mxu0  ;;  %v2269_v33 = vpop.f32.mrb[54].mxu1 }
 0x148   :  { %v1995_v34 = vpack.c.bf16 %v1533_v61, %v1532_v0  ;;  %v1457_v35 = vmax.f32 %v1385_v13, %v1421_v14  ;;  %v1386_v12 = vmax.f32 %v2752_v50, %v2197_v32  ;;  %v1422_v36 = vmax.f32 %v2754_v51, %v2269_v33  ;;  %v1003_v23 = vpop.f32.mrb[55].mxu0  ;;  %v1291_v46 = vpop.f32.mrb[55].mxu1  ;;  %v3021_v0 = vld [vmem:[#allocation3_spill] sm:$0xff]  ;;  %v3022_v13 = vld [vmem:[#allocation4_spill] sm:$0xff]  ;;  %v3024_v32 = vld [vmem:[#allocation6_spill] sm:$0xff] }
 0x149   :  { %v1990_v37 = vpack.c.bf16 %v1531_v31, %v1530_v62  ;;  %v1455_v47 = vmax.f32 %v1383_v15, %v1419_v22  ;;  %v1384_v17 = vmax.f32 %v2756_v52, %v1003_v23  ;;  %v1420_v16 = vmax.f32 %v2758_v53, %v1291_v46  ;;  %v3023_v15 = vld [vmem:[#allocation5_spill] sm:$0xff]  ;;  %v3025_v23 = vld [vmem:[#allocation7_spill] sm:$0xff] }
 0x14a   :  { %2053 = vst [vmem:[%s2994_s3 + $0x38] sm:$0xff] %v1995_v34   ;;  %v1500_v48 = vadd.f32 %v2829_v6, %v1457_v35  ;;  %v1458_v49 = vmax.f32 %v1386_v12, %v1422_v36 }
 0x14b   :  { %2052 = vst [vmem:[%s2994_s3 + $0x30] sm:$0xff] %v1990_v37   ;;  %v1498_v50 = vadd.f32 %v2829_v6, %v1455_v47  ;;  %v1456_v51 = vmax.f32 %v1384_v17, %v1420_v16  ;;  %v3026_v37 = vld [vmem:[#allocation8_spill] sm:$0xff] }
 0x14c   :  { %v1501_v24 = vadd.f32 %v2829_v6, %v1458_v49  ;;  %v1536_v26 = vmax.f32 %v1500_v48, 0.0 }
 0x14d   :  { %v1499_v52 = vadd.f32 %v2829_v6, %v1456_v51  ;;  %v2200_v25 = vpop.f32.mrb[56].mxu0  ;;  %v2272_v53 = vpop.f32.mrb[56].mxu1  ;;  %v1534_v18 = vmax.f32 %v1498_v50, 0.0  ;;  %v3027_v50 = vld [vmem:[#allocation9_spill] sm:$0xff] }
 0x14e   :  { %v1537_v27 = vmax.f32 %v1501_v24, 0.0  ;;  %v1389_v2 = vmax.f32 %v2760_v54, %v2200_v25  ;;  %v1425_v28 = vmax.f32 %v2762_v55, %v2272_v53  ;;  %v1016_v3 = vpop.f32.mrb[57].mxu0  ;;  %v1304_v29 = vpop.f32.mrb[57].mxu1  ;;  %v3028_v24 = vld [vmem:[#allocation10_spill] sm:$0xff] }
 0x14f   :  { %v1535_v4 = vmax.f32 %v1499_v52, 0.0  ;;  %v1387_v19 = vmax.f32 %v2764_v56, %v1016_v3  ;;  %v1423_v5 = vmax.f32 %v2766_v57, %v1304_v29  ;;  %v2201_v7 = vpop.f32.mrb[58].mxu0  ;;  %v2273_v20 = vpop.f32.mrb[58].mxu1 }
 0x150   :  { %v2005_v8 = vpack.c.bf16 %v1537_v27, %v1536_v26  ;;  %v1461_v38 = vmax.f32 %v1389_v2, %v1425_v28  ;;  %v1390_v21 = vmax.f32 %v2768_v58, %v2201_v7  ;;  %v1426_v39 = vmax.f32 %v2770_v59, %v2273_v20  ;;  %v1019_v9 = vpop.f32.mrb[59].mxu0  ;;  %v1307_v54 = vpop.f32.mrb[59].mxu1  ;;  %v3030_v7 = vld [vmem:[#allocation12_spill] sm:$0xff] }
 0x151   :  { %v2000_v10 = vpack.c.bf16 %v1535_v4, %v1534_v18  ;;  %v1459_v55 = vmax.f32 %v1387_v19, %v1423_v5  ;;  %v1388_v40 = vmax.f32 %v2772_v60, %v1019_v9  ;;  %v1424_v42 = vmax.f32 %v3020_v41, %v1307_v54  ;;  %v3029_v19 = vld [vmem:[#allocation11_spill] sm:$0xff]  ;;  %v3031_v9 = vld [vmem:[#allocation13_spill] sm:$0xff] }
 0x152   :  { %2055 = vst [vmem:[%s2994_s3 + $0x48] sm:$0xff] %v2005_v8   ;;  %v1504_v56 = vadd.f32 %v2829_v6, %v1461_v38  ;;  %v1462_v57 = vmax.f32 %v1390_v21, %v1426_v39 }
 0x153   :  { %2054 = vst [vmem:[%s2994_s3 + $0x40] sm:$0xff] %v2000_v10   ;;  %v1502_v58 = vadd.f32 %v2829_v6, %v1459_v55  ;;  %v1460_v59 = vmax.f32 %v1388_v40, %v1424_v42  ;;  %v3032_v10 = vld [vmem:[#allocation14_spill] sm:$0xff] }
 0x154   :  { %v1505_v43 = vadd.f32 %v2829_v6, %v1462_v57  ;;  %v1540_v63 = vmax.f32 %v1504_v56, 0.0  ;;  %v3033_v57 = vld [vmem:[#allocation15_spill] sm:$0xff] }
 0x155   :  { %v1503_v60 = vadd.f32 %v2829_v6, %v1460_v59  ;;  %v2204_v1 = vpop.f32.mrb[60].mxu0  ;;  %v2276_v44 = vpop.f32.mrb[60].mxu1  ;;  %v1538_v62 = vmax.f32 %v1502_v58, 0.0  ;;  %v3034_v59 = vld [vmem:[#allocation16_spill] sm:$0xff] }
 0x156   :  { %v1541_v45 = vmax.f32 %v1505_v43, 0.0  ;;  %v1393_v61 = vmax.f32 %v3021_v0, %v2204_v1  ;;  %v1429_v14 = vmax.f32 %v3022_v13, %v2276_v44  ;;  %v1032_v11 = vpop.f32.mrb[61].mxu0  ;;  %v1320_v30 = vpop.f32.mrb[61].mxu1 }
 0x157   :  { %v1539_v31 = vmax.f32 %v1503_v60, 0.0  ;;  %v1391_v22 = vmax.f32 %v3023_v15, %v1032_v11  ;;  %v1427_v33 = vmax.f32 %v3024_v32, %v1320_v30  ;;  %v2205_v34 = vpop.f32.mrb[62].mxu0  ;;  %v2277_v35 = vpop.f32.mrb[62].mxu1 }
 0x158   :  { %v2015_v12 = vpack.c.bf16 %v1541_v45, %v1540_v63  ;;  %v1465_v36 = vmax.f32 %v1393_v61, %v1429_v14  ;;  %v1394_v46 = vmax.f32 %v3025_v23, %v2205_v34  ;;  %v1430_v47 = vmax.f32 %v3026_v37, %v2277_v35  ;;  %v1035_v17 = vpop.f32.mrb[63].mxu0  ;;  %v1323_v16 = vpop.f32.mrb[63].mxu1  ;;  %v3035_v45 = vld [vmem:[#allocation17_spill] sm:$0xff]  ;;  %v3036_v61 = vld [vmem:[#allocation18_spill] sm:$0xff]  ;;  %v3037_v35 = vld [vmem:[#allocation19_spill] sm:$0xff] }
 0x159   :  { %v2010_v48 = vpack.c.bf16 %v1539_v31, %v1538_v62  ;;  %v1463_v49 = vmax.f32 %v1391_v22, %v1427_v33  ;;  %v1392_v51 = vmax.f32 %v3027_v50, %v1035_v17  ;;  %v1428_v52 = vmax.f32 %v3028_v24, %v1323_v16  ;;  %v3039_v16 = vld [vmem:[#allocation21_spill] sm:$0xff] }
 0x15a   :  { %2057 = vst [vmem:[%s2994_s3 + $0x58] sm:$0xff] %v2015_v12   ;;  %v1508_v25 = vadd.f32 %v2829_v6, %v1465_v36  ;;  %v1466_v53 = vmax.f32 %v1394_v46, %v1430_v47  ;;  %v3038_v36 = vld [vmem:[#allocation20_spill] sm:$0xff] }
 0x15b   :  { %2056 = vst [vmem:[%s2994_s3 + $0x50] sm:$0xff] %v2010_v48   ;;  %v1506_v26 = vadd.f32 %v2829_v6, %v1463_v49  ;;  %v1464_v27 = vmax.f32 %v1392_v51, %v1428_v52  ;;  %v3040_v49 = vld [vmem:[#allocation22_spill] sm:$0xff] }
 0x15c   :  { %v1509_v2 = vadd.f32 %v2829_v6, %v1466_v53  ;;  %v1544_v18 = vmax.f32 %v1508_v25, 0.0  ;;  %v3041_v53 = vld [vmem:[#allocation23_spill] sm:$0xff] }
 0x15d   :  { %v1507_v28 = vadd.f32 %v2829_v6, %v1464_v27  ;;  %v2208_v3 = vpop.f32.mrb[64].mxu0  ;;  %v2280_v29 = vpop.f32.mrb[64].mxu1  ;;  %v1542_v21 = vmax.f32 %v1506_v26, 0.0  ;;  %v3042_v27 = vld [vmem:[#allocation24_spill] sm:$0xff] }
 0x15e   :  { %v1545_v4 = vmax.f32 %v1509_v2, 0.0  ;;  %v1397_v5 = vmax.f32 %v3029_v19, %v2208_v3  ;;  %v1433_v20 = vmax.f32 %v3030_v7, %v2280_v29  ;;  %v1048_v8 = vpop.f32.mrb[65].mxu0  ;;  %v1336_v38 = vpop.f32.mrb[65].mxu1 }
 0x15f   :  { %v1543_v39 = vmax.f32 %v1507_v28, 0.0  ;;  %v1395_v54 = vmax.f32 %v3031_v9, %v1048_v8  ;;  %v1431_v55 = vmax.f32 %v3032_v10, %v1336_v38  ;;  %v2209_v40 = vpop.f32.mrb[66].mxu0  ;;  %v2281_v41 = vpop.f32.mrb[66].mxu1 }
 0x160   :  { %v2025_v42 = vpack.c.bf16 %v1545_v4, %v1544_v18  ;;  %v1469_v56 = vmax.f32 %v1397_v5, %v1433_v20  ;;  %v1398_v58 = vmax.f32 %v3033_v57, %v2209_v40  ;;  %v1434_v43 = vmax.f32 %v3034_v59, %v2281_v41  ;;  %v1051_v60 = vpop.f32.mrb[67].mxu0  ;;  %v1339_v1 = vpop.f32.mrb[67].mxu1  ;;  %v3043_v4 = vld [vmem:[#allocation25_spill] sm:$0xff]  ;;  %v3044_v5 = vld [vmem:[#allocation26_spill] sm:$0xff] }
 0x161   :  { %v2020_v44 = vpack.c.bf16 %v1543_v39, %v1542_v21  ;;  %v1467_v63 = vmax.f32 %v1395_v54, %v1431_v55  ;;  %v1396_v0 = vmax.f32 %v3035_v45, %v1051_v60  ;;  %v1432_v13 = vmax.f32 %v3036_v61, %v1339_v1 }
 0x162   :  { %2059 = vst [vmem:[%s2994_s3 + $0x68] sm:$0xff] %v2025_v42   ;;  %v1512_v14 = vadd.f32 %v2829_v6, %v1469_v56  ;;  %v1470_v11 = vmax.f32 %v1398_v58, %v1434_v43 }
 0x163   :  { %2058 = vst [vmem:[%s2994_s3 + $0x60] sm:$0xff] %v2020_v44   ;;  %v1510_v30 = vadd.f32 %v2829_v6, %v1467_v63  ;;  %v1468_v62 = vmax.f32 %v1396_v0, %v1432_v13 }
 0x164   :  { %v1513_v31 = vadd.f32 %v2829_v6, %v1470_v11  ;;  %v1548_v33 = vmax.f32 %v1512_v14, 0.0 }
 0x165   :  { %v1511_v15 = vadd.f32 %v2829_v6, %v1468_v62  ;;  %v2212_v22 = vpop.f32.mrb[68].mxu0  ;;  %v2284_v32 = vpop.f32.mrb[68].mxu1  ;;  %v1546_v47 = vmax.f32 %v1510_v30, 0.0 }
 0x166   :  { %v1549_v34 = vmax.f32 %v1513_v31, 0.0  ;;  %v1401_v12 = vmax.f32 %v3037_v35, %v2212_v22  ;;  %v1437_v23 = vmax.f32 %v3038_v36, %v2284_v32  ;;  %v1064_v46 = vpop.f32.mrb[69].mxu0  ;;  %v1352_v37 = vpop.f32.mrb[69].mxu1 }
 0x167   :  { %v1547_v17 = vmax.f32 %v1511_v15, 0.0  ;;  %v1399_v48 = vmax.f32 %v3039_v16, %v1064_v46  ;;  %v1435_v50 = vmax.f32 %v3040_v49, %v1352_v37  ;;  %v2213_v51 = vpop.f32.mrb[70].mxu0  ;;  %v2285_v24 = vpop.f32.mrb[70].mxu1 }
 0x168   :  { %v2035_v52 = vpack.c.bf16 %v1549_v34, %v1548_v33  ;;  %v1473_v25 = vmax.f32 %v1401_v12, %v1437_v23  ;;  %v1402_v26 = vmax.f32 %v3041_v53, %v2213_v51  ;;  %v1438_v2 = vmax.f32 %v3042_v27, %v2285_v24  ;;  %v1067_v28 = vpop.f32.mrb[71].mxu0  ;;  %v1355_v3 = vpop.f32.mrb[71].mxu1 }
 0x169   :  { %v2030_v29 = vpack.c.bf16 %v1547_v17, %v1546_v47  ;;  %v1471_v18 = vmax.f32 %v1399_v48, %v1435_v50  ;;  %v1400_v19 = vmax.f32 %v3043_v4, %v1067_v28  ;;  %v1436_v7 = vmax.f32 %v3044_v5, %v1355_v3 }
 0x16a   :  { %2061 = vst [vmem:[%s2994_s3 + $0x78] sm:$0xff] %v2035_v52   ;;  %v1516_v20 = vadd.f32 %v2829_v6, %v1473_v25  ;;  %v1474_v8 = vmax.f32 %v1402_v26, %v1438_v2 }
 0x16b   :  { %2060 = vst [vmem:[%s2994_s3 + $0x70] sm:$0xff] %v2030_v29   ;;  %v1514_v38 = vadd.f32 %v2829_v6, %v1471_v18  ;;  %v1472_v21 = vmax.f32 %v1400_v19, %v1436_v7 }
 0x16c   :  { %v1517_v39 = vadd.f32 %v2829_v6, %v1474_v8  ;;  %v1552_v54 = vmax.f32 %v1516_v20, 0.0 }
 0x16d   :  { %v1515_v9 = vadd.f32 %v2829_v6, %v1472_v21  ;;  %v1550_v55 = vmax.f32 %v1514_v38, 0.0 }
 0x16e   :  { %v1553_v10 = vmax.f32 %v1517_v39, 0.0 }
 0x16f   :  { %v1551_v40 = vmax.f32 %v1515_v9, 0.0 }
 0x170   :  { %v2045_v41 = vpack.c.bf16 %v1553_v10, %v1552_v54 }
 0x171   :  { %v2040_v42 = vpack.c.bf16 %v1551_v40, %v1550_v55 }
 0x172   :  { %2063 = vst [vmem:[%s2994_s3 + $0x88] sm:$0xff] %v2045_v41  }
 0x173   :  { %2062 = vst [vmem:[%s2994_s3 + $0x80] sm:$0xff] %v2040_v42  }

// kernel: net_conv_part.3
= control target key start
LH: loop header
LB: loop body
LE: loop exit
PB: predicated region body
PF: predicated region fallthrough
CT: control target
= control target key end

     0   :  { %vm230_vm0 = vcmask 998400   ;;  %vm255_vm1 = vcmask 1044480   ;;  %s718_s1 = inlined_call_operand.vmem [shape: bf16[250,128], index: 1, kind: input, shape index: {}]   ;;  %s719_s0 = inlined_call_operand.vmem [shape: bf16[128,250], index: 0, kind: input, shape index: {}]   ;;  %s720_s2 = inlined_call_operand.vmem [shape: f32[1,128], index: 2, kind: input, shape index: {}]   ;;  %s721_s3 = inlined_call_operand.vmem [shape: bf16[32,128], index: 3, kind: output, shape index: {}]  }
   0x1   :  { %v545_v0 = vld [vmem:[%s718_s1 + $0x40] sm:$0xff]   ;;  %v547_v2 = vld [vmem:[%s718_s1 + $0x48] sm:$0xff]   ;;  %v549_v4 = vld [vmem:[%s718_s1 + $0x50] sm:$0xff]  }
   0x2   :  { %v546_v1 = vld [vmem:[%s718_s1] sm:$0xff]   ;;  %463 = vmatprep.subr.bf16.mxu0 %v545_v0  ;;  %527 = vmatprep.subr.bf16.mxu1 %v545_v0  ;;  %v548_v3 = vld [vmem:[%s718_s1 + $0x8] sm:$0xff]   ;;  %v550_v5 = vld [vmem:[%s718_s1 + $0x10] sm:$0xff]  }
   0x3   :  { %464 = vmatpush3.bf16.msra.mxu0 %v546_v1  ;;  %535 = vmatpush3.bf16.msra.mxu1 %v546_v1  ;;  %v551_v6 = vld [vmem:[%s718_s1 + $0x58] sm:$0xff]   ;;  %v553_v8 = vld [vmem:[%s718_s1 + $0x60] sm:$0xff]   ;;  %v555_v10 = vld [vmem:[%s718_s1 + $0x68] sm:$0xff]  }
   0x4   :  { %465 = vmatprep.subr.bf16.mxu0 %v547_v2  ;;  %528 = vmatprep.subr.bf16.mxu1 %v547_v2  ;;  %v552_v7 = vld [vmem:[%s718_s1 + $0x18] sm:$0xff]   ;;  %v554_v9 = vld [vmem:[%s718_s1 + $0x20] sm:$0xff]   ;;  %v556_v13 = vld [vmem:[%s718_s1 + $0x28] sm:$0xff]  }
   0x5   :  { %v563_v11 = vld [vmem:[%s719_s0 + $0x4] ss:$8 sps:$4 sm:$0xff]   ;;  %v557_v14 = vld [vmem:[%s718_s1 + $0x70] sm:$0xff]   ;;  %v559_v16 = vld [vmem:[%s718_s1 + $0x78] sm:$0x1f]  }
   0x6   :  { %v566_v12 = vld [vmem:[%s719_s0 + $0x44] ss:$8 sps:$4 sm:$0xff]   ;;  %435 = vmatprep.mubr.msk.bf16.mxu0 %vm230_vm0, %v563_v11  ;;  %v558_v15 = vld [vmem:[%s718_s1 + $0x30] sm:$0xff]   ;;  %v560_v17 = vld [vmem:[%s718_s1 + $0x38] sm:$0xff]  }
   0x7   :  { %466 = vmatpush3.bf16.msra.mxu0 %v548_v3  ;;  %536 = vmatpush3.bf16.msra.mxu1 %v548_v3  ;;  %v561_v18 = vld [vmem:[%s719_s0] ss:$8 sps:$4 sm:$0xff]   ;;  %v567_v20 = vld [vmem:[%s719_s0 + $0x14] ss:$8 sps:$4 sm:$0xff]   ;;  %v571_v22 = vld [vmem:[%s719_s0 + $0x10] ss:$8 sps:$4 sm:$0xff]  }
   0x8   :  { %467 = vmatprep.subr.bf16.mxu0 %v549_v4  ;;  %529 = vmatprep.subr.bf16.mxu1 %v549_v4  ;;  %v564_v19 = vld [vmem:[%s719_s0 + $0x40] ss:$8 sps:$4 sm:$0xff]   ;;  %v569_v21 = vld [vmem:[%s719_s0 + $0x54] ss:$8 sps:$4 sm:$0xff]   ;;  %v572_v23 = vld [vmem:[%s719_s0 + $0x50] ss:$8 sps:$4 sm:$0xff]  }
   0x9   :  { %439 = vmatprep.mubr.msk.bf16.mxu1 %vm230_vm0, %v566_v12  ;;  %v573_v24 = vld [vmem:[%s719_s0 + $0x24] ss:$8 sps:$4 sm:$0xff]   ;;  %v577_v26 = vld [vmem:[%s719_s0 + $0x20] ss:$8 sps:$4 sm:$0xff]   ;;  %v579_v28 = vld [vmem:[%s719_s0 + $0x34] ss:$8 sps:$4 sm:$0xff]  }
   0xa   :  { %v575_v25 = vld [vmem:[%s719_s0 + $0x64] ss:$8 sps:$4 sm:$0xff]   ;;  %v578_v27 = vld [vmem:[%s719_s0 + $0x60] ss:$8 sps:$4 sm:$0xff]   ;;  %v581_v29 = vld [vmem:[%s719_s0 + $0x74] ss:$8 sps:$4 sm:$0xff]  }
   0xb   :  { %468 = vmatpush3.bf16.msra.mxu0 %v550_v5  ;;  %537 = vmatpush3.bf16.msra.mxu1 %v550_v5  ;;  %v583_v30 = vld [vmem:[%s719_s0 + $0x30] ss:$8 sps:$4 sm:$0xff]  }
   0xc   :  { %469 = vmatprep.subr.bf16.mxu0 %v551_v6  ;;  %530 = vmatprep.subr.bf16.mxu1 %v551_v6  ;;  %v584_v31 = vld [vmem:[%s719_s0 + $0x70] ss:$8 sps:$4 sm:$0xff]  }
   0xf   :  { %470 = vmatpush3.bf16.msra.mxu0 %v552_v7  ;;  %538 = vmatpush3.bf16.msra.mxu1 %v552_v7 }
  0x10   :  { %471 = vmatprep.subr.bf16.mxu0 %v553_v8  ;;  %531 = vmatprep.subr.bf16.mxu1 %v553_v8 }
  0x13   :  { %472 = vmatpush3.bf16.msra.mxu0 %v554_v9  ;;  %539 = vmatpush3.bf16.msra.mxu1 %v554_v9  ;;  %v443_v9 = vld [vmem:[%s720_s2] ss:$0 sm:$0xff] }
  0x14   :  { %473 = vmatprep.subr.bf16.mxu0 %v555_v10  ;;  %532 = vmatprep.subr.bf16.mxu1 %v555_v10 }
  0x17   :  { %474 = vmatpush3.bf16.msra.mxu0 %v556_v13  ;;  %540 = vmatpush3.bf16.msra.mxu1 %v556_v13 }
  0x18   :  { %475 = vmatprep.subr.bf16.mxu0 %v557_v14  ;;  %533 = vmatprep.subr.bf16.mxu1 %v557_v14 }
  0x1b   :  { %476 = vmatpush3.bf16.msra.mxu0 %v558_v15  ;;  %541 = vmatpush3.bf16.msra.mxu1 %v558_v15 }
  0x1c   :  { %543 = vmatprep.subr.msk.bf16.mxu0 %vm255_vm1, %v559_v16  ;;  %544 = vmatprep.subr.msk.bf16.mxu1 %vm255_vm1, %v559_v16 }
  0x1f   :  { %478 = vmatpush3.bf16.msra.mxu0 %v560_v17  ;;  %542 = vmatpush3.bf16.msra.mxu1 %v560_v17 }
  0x22   :  { %292 = vmatmul.mubr.bf16.vlgmr.msra.gmra.mrb[0].mxu0 %v561_v18  ;;  %324 = vmatmul.mubr.bf16.vlgmr.msra.gmra.mrb[0].mxu1 %v564_v19 }
  0x23   :  { %436 = vmatprep.mubr.msk.bf16.mxu0 %vm230_vm0, %v567_v20  ;;  %440 = vmatprep.mubr.msk.bf16.mxu1 %vm230_vm0, %v569_v21 }
  0x2a   :  { %300 = vmatmul.mubr.bf16.gmra.mrb[4].mxu0 %v571_v22  ;;  %332 = vmatmul.mubr.bf16.gmra.mrb[4].mxu1 %v572_v23 }
  0x2b   :  { %437 = vmatprep.mubr.msk.bf16.mxu0 %vm230_vm0, %v573_v24  ;;  %441 = vmatprep.mubr.msk.bf16.mxu1 %vm230_vm0, %v575_v25 }
  0x32   :  { %308 = vmatmul.mubr.bf16.gmra.mrb[8].mxu0 %v577_v26  ;;  %340 = vmatmul.mubr.bf16.gmra.mrb[8].mxu1 %v578_v27 }
  0x33   :  { %438 = vmatprep.mubr.msk.bf16.mxu0 %vm230_vm0, %v579_v28  ;;  %442 = vmatprep.mubr.msk.bf16.mxu1 %vm230_vm0, %v581_v29 }
  0x3a   :  { %316 = vmatmul.mubr.bf16.gmra.mrb[12].mxu0 %v583_v30  ;;  %348 = vmatmul.mubr.bf16.gmra.mrb[12].mxu1 %v584_v31 }
  0xf5   :  { %v479_v32 = vpop.f32.mrb[0].mxu0  ;;  %v503_v33 = vpop.f32.mrb[0].mxu1 }
  0xf6   :  { %v480_v34 = vpop.f32.mrb[1].mxu0  ;;  %v504_v35 = vpop.f32.mrb[1].mxu1 }
  0xf7   :  { %v481_v36 = vadd.f32 %v480_v34, %v479_v32  ;;  %v505_v37 = vadd.f32 %v504_v35, %v503_v33  ;;  %v482_v38 = vpop.f32.mrb[2].mxu0  ;;  %v506_v39 = vpop.f32.mrb[2].mxu1 }
  0xf8   :  { %v483_v40 = vpop.f32.mrb[3].mxu0  ;;  %v507_v41 = vpop.f32.mrb[3].mxu1 }
  0xf9   :  { %v484_v42 = vadd.f32 %v483_v40, %v482_v38  ;;  %v508_v43 = vadd.f32 %v507_v41, %v506_v39 }
  0xfd   :  { %v485_v44 = vpop.f32.mrb[4].mxu0  ;;  %v509_v45 = vpop.f32.mrb[4].mxu1 }
  0xfe   :  { %v486_v46 = vpop.f32.mrb[5].mxu0  ;;  %v510_v47 = vpop.f32.mrb[5].mxu1 }
  0xff   :  { %v487_v48 = vadd.f32 %v486_v46, %v485_v44  ;;  %v511_v49 = vadd.f32 %v510_v47, %v509_v45  ;;  %v488_v50 = vpop.f32.mrb[6].mxu0  ;;  %v512_v51 = vpop.f32.mrb[6].mxu1 }
 0x100   :  { %v489_v52 = vpop.f32.mrb[7].mxu0  ;;  %v513_v53 = vpop.f32.mrb[7].mxu1 }
 0x101   :  { %v490_v54 = vadd.f32 %v489_v52, %v488_v50  ;;  %v514_v55 = vadd.f32 %v513_v53, %v512_v51 }
 0x105   :  { %v491_v56 = vpop.f32.mrb[8].mxu0  ;;  %v515_v57 = vpop.f32.mrb[8].mxu1 }
 0x106   :  { %v492_v58 = vpop.f32.mrb[9].mxu0  ;;  %v516_v59 = vpop.f32.mrb[9].mxu1 }
 0x107   :  { %v493_v60 = vadd.f32 %v492_v58, %v491_v56  ;;  %v517_v61 = vadd.f32 %v516_v59, %v515_v57  ;;  %v494_v62 = vpop.f32.mrb[10].mxu0  ;;  %v518_v63 = vpop.f32.mrb[10].mxu1 }
 0x108   :  { %v495_v0 = vpop.f32.mrb[11].mxu0  ;;  %v519_v1 = vpop.f32.mrb[11].mxu1 }
 0x109   :  { %v356_v2 = vmax.f32 %v481_v36, %v493_v60  ;;  %v360_v3 = vmax.f32 %v505_v37, %v517_v61  ;;  %v496_v4 = vadd.f32 %v495_v0, %v494_v62  ;;  %v520_v5 = vadd.f32 %v519_v1, %v518_v63 }
 0x10b   :  { %v364_v6 = vmax.f32 %v356_v2, %v360_v3  ;;  %v357_v7 = vmax.f32 %v484_v42, %v496_v4  ;;  %v361_v8 = vmax.f32 %v508_v43, %v520_v5 }
 0x10d   :  { %v365_v10 = vmax.f32 %v357_v7, %v361_v8  ;;  %v497_v11 = vpop.f32.mrb[12].mxu0  ;;  %v521_v12 = vpop.f32.mrb[12].mxu1  ;;  %v375_v15 = vadd.f32 %v443_v9, %v364_v6 }
 0x10e   :  { %v498_v13 = vpop.f32.mrb[13].mxu0  ;;  %v522_v14 = vpop.f32.mrb[13].mxu1 }
 0x10f   :  { %v376_v16 = vadd.f32 %v443_v9, %v365_v10  ;;  %v499_v17 = vadd.f32 %v498_v13, %v497_v11  ;;  %v523_v18 = vadd.f32 %v522_v14, %v521_v12  ;;  %v500_v19 = vpop.f32.mrb[14].mxu0  ;;  %v524_v20 = vpop.f32.mrb[14].mxu1 }
 0x110   :  { %v501_v21 = vpop.f32.mrb[15].mxu0  ;;  %v525_v22 = vpop.f32.mrb[15].mxu1 }
 0x111   :  { %v455_v23 = vpack.c.bf16 %v376_v16, %v375_v15  ;;  %v358_v24 = vmax.f32 %v487_v48, %v499_v17  ;;  %v362_v25 = vmax.f32 %v511_v49, %v523_v18  ;;  %v502_v26 = vadd.f32 %v501_v21, %v500_v19 }
 0x112   :  { %v526_v27 = vadd.f32 %v525_v22, %v524_v20 }
 0x113   :  { %456 = vst [vmem:[%s721_s3] sm:$0xff] %v455_v23   ;;  %v366_v28 = vmax.f32 %v358_v24, %v362_v25  ;;  %v359_v29 = vmax.f32 %v490_v54, %v502_v26 }
 0x114   :  { %v363_v30 = vmax.f32 %v514_v55, %v526_v27 }
 0x115   :  { %v377_v32 = vadd.f32 %v443_v9, %v366_v28 }
 0x116   :  { %v367_v31 = vmax.f32 %v359_v29, %v363_v30 }
 0x118   :  { %v378_v33 = vadd.f32 %v443_v9, %v367_v31 }
 0x11a   :  { %v460_v34 = vpack.c.bf16 %v378_v33, %v377_v32 }
 0x11c   :  { %462 = vst [vmem:[%s721_s3 + $0x8] sm:$0xff] %v460_v34  }

</bundles_post_ra>
